<compile_context>
chip_gen: v7x
topology: tpu7x:2x2x1
jax: 0.10.0
libtpu: 0.0.40
codegen_flags: <defaults>
</compile_context>

<pallas_src>
from functools import partial

import jax
import jax.numpy as jnp
from jax import lax
from jax.experimental import pallas as pl
from jax.experimental.pallas import tpu as pltpu


def _apply_activ(y, activ_fn):
    if activ_fn == "SiLU":
        return y * jax.nn.sigmoid(y)
    elif activ_fn == "GELU":
        return jax.nn.gelu(y, approximate=False)   # PyTorch nn.GELU default = exact
    elif activ_fn == "ReLU":
        return jnp.maximum(y, 0.0)
    elif activ_fn == "LeakyReLU":
        return jnp.where(y >= 0, y, 0.01 * y)      # PyTorch default negative_slope=0.01
    else:
        raise ValueError(f"activation function {activ_fn} is not supported")


def _dense_conv_block_kernel(x_ref, scale_ref, shift_ref, w_ref, b_ref, o_ref,
                             ypad_ref, *, activ_fn, pad, pad_top):
    # x_ref:     (1, H, W*C)          one image; W and C fused on the lane axis
    # scale_ref: (1, W*C)             fused BN scale = gamma / sqrt(var+eps), tiled over W
    # shift_ref: (1, W*C)             fused BN shift = beta - mean*scale,     tiled over W
    # w_ref:     (KH, W*C, Wo*F)      width-lowered (Toeplitz) conv weights, bf16
    # b_ref:     (1, Wo*F)            conv bias tiled over Wo
    # o_ref:     (1, TH, Wo*F)        lane-dense output row tile
    # ypad_ref:  (pad_top+H+pad, W*C) f32 scratch: activated image, zero rows for H-padding
    _, H, WC = x_ref.shape
    KH = w_ref.shape[0]
    _, TH, WoF = o_ref.shape
    t = pl.program_id(1)

    # --- fill the activation scratch once per image; later row tiles of the same image reuse it
    @pl.when(t == 0)
    def _fill():
        x = x_ref[0].astype(jnp.float32)
        y = _apply_activ(x * scale_ref[0] + shift_ref[0], activ_fn)   # BN(eval) + activation (f32)
        # Dropout in eval mode is the identity.
        # Border-only zeroing (interior is fully overwritten below). Top border is an
        # 8-row-aligned slab so the interior write below starts sublane-aligned.
        if pad_top > 0:
            ypad_ref[0:pad_top, :] = jnp.zeros((pad_top, WC), ypad_ref.dtype)
        if pad > 0:
            ypad_ref[pad_top + H:pad_top + H + pad, :] = jnp.zeros((pad, WC), ypad_ref.dtype)
        ypad_ref[pad_top:pad_top + H, :] = y

    # --- conv: KH lane-dense matmuls (K = W*C, N = Wo*F); width padding + KW taps are folded
    #     into w_ref, so each lhs is just a contiguous sublane slice of the scratch.
    base = pad_top - pad              # scratch row read by tap dy=0 of output row 0
    r0 = t * TH                       # first output row of this tile
    acc = jnp.zeros((TH, WoF), jnp.float32)
    for dy in range(KH):              # static unroll
        lhs = ypad_ref[pl.ds(base + r0 + dy, TH), :].astype(jnp.bfloat16)
        acc = acc + jnp.dot(lhs, w_ref[dy], preferred_element_type=jnp.float32)
    o_ref[0] = (acc + b_ref[0]).astype(o_ref.dtype)


def dense_conv_block(x_nchw, gamma, beta, running_mean, running_var,
                     w_oihw, bias, *, pad, activ_fn="SiLU", eps=1e-5):
    """Pallas implementation of DenseConvBlock.forward (eval mode). x is NCHW."""
    N, C, H, W = x_nchw.shape
    F, Cw, KH, KW = w_oihw.shape
    assert Cw == C
    # The module always builds nn.Conv2d(ichan, features, kernel, stride=1, padding=pad):
    # stride=1 / dilation=1 are assumed throughout.
    Ho = H + 2 * pad - KH + 1
    Wo = W + 2 * pad - KW + 1
    assert Ho > 0 and Wo > 0

    # ---- layout plumbing + parameter folding (wrapper-side, plain JAX) ----
    x = jnp.transpose(x_nchw, (0, 2, 3, 1)).reshape(N, H, W * C)          # NCHW -> (N, H, W*C)

    inv_std = 1.0 / jnp.sqrt(running_var + eps)
    scale_c = (gamma * inv_std).astype(jnp.float32)
    shift_c = (beta - running_mean * gamma * inv_std).astype(jnp.float32)
    scale = jnp.tile(scale_c, W)[None, :]                                 # (1, W*C)
    shift = jnp.tile(shift_c, W)[None, :]                                 # (1, W*C)
    b = jnp.tile(bias.astype(jnp.float32), Wo)[None, :]                   # (1, Wo*F)

    # Width-lowered ("Toeplitz") conv weights: toep[dy, wx*C+c, wo*F+f] = w[dy, wx-wo+pad, c, f]
    # (zero when the tap falls outside [0, KW), which also absorbs the width zero-padding).
    # This targets the small-C/F regime of this block; for C,F >= 128 a per-tap C-on-lanes
    # matmul would be preferable to the KW-fold weight duplication.
    w_hwio = jnp.transpose(w_oihw, (2, 3, 1, 0)).astype(jnp.float32)      # (KH, KW, C, F)
    wx = jnp.arange(W)
    wo = jnp.arange(Wo)
    dx = wx[:, None] - wo[None, :] + pad                                  # (W, Wo)
    valid = (dx >= 0) & (dx < KW)
    toep = w_hwio[:, jnp.clip(dx, 0, KW - 1), :, :]                       # (KH, W, Wo, C, F)
    toep = jnp.where(valid[None, :, :, None, None], toep, 0.0)
    toep = jnp.transpose(toep, (0, 1, 3, 2, 4)).reshape(KH, W * C, Wo * F)
    toep = toep.astype(jnp.bfloat16)              # bf16 MXU operands, f32 accumulation in-kernel

    # Output row tiling -> more grid steps for the pipeline (and v7x's 2 TensorCores).
    TH = 8 if (Ho % 8 == 0 and Ho > 8) else Ho
    T = Ho // TH

    # Sublane-aligned top padding in the scratch so the interior activation write is aligned.
    pad_top = ((pad + 7) // 8) * 8 if pad > 0 else 0
    Hs = pad_top + H + pad
    # TODO(synk): for large H the whole-image activation scratch should itself be row-tiled with
    #             a KH-1 halo (recompute-at-edges) to respect v7x's 64 MiB VMEM; not needed here.

    kernel = partial(_dense_conv_block_kernel, activ_fn=activ_fn, pad=pad, pad_top=pad_top)

    out = pl.pallas_call(
        kernel,
        out_shape=jax.ShapeDtypeStruct((N, Ho, Wo * F), x_nchw.dtype),
        grid_spec=pltpu.PrefetchScalarGridSpec(
            num_scalar_prefetch=0,
            grid=(N, T),
            in_specs=[
                pl.BlockSpec((1, H, W * C), lambda n, t: (n, 0, 0)),   # resident across t
                pl.BlockSpec((1, W * C), lambda n, t: (0, 0)),
                pl.BlockSpec((1, W * C), lambda n, t: (0, 0)),
                pl.BlockSpec((KH, W * C, Wo * F), lambda n, t: (0, 0, 0)),
                pl.BlockSpec((1, Wo * F), lambda n, t: (0, 0)),
            ],
            out_specs=pl.BlockSpec((1, TH, Wo * F), lambda n, t: (n, t, 0)),
            scratch_shapes=[pltpu.VMEM((Hs, W * C), jnp.float32)],
        ),
        compiler_params=pltpu.CompilerParams(
            dimension_semantics=("parallel", "arbitrary")),
    )(x, scale, shift, toep, b)

    out = out.reshape(N, Ho, Wo, F)
    return jnp.transpose(out, (0, 3, 1, 2))                              # -> NCHW


def _reference(x_nchw, gamma, beta, running_mean, running_var, w_oihw, bias,
               *, pad, activ_fn="SiLU", eps=1e-5):
    """Pure-JAX reference matching the PyTorch forward (eval mode), NCHW, f32 throughout."""
    inv_std = 1.0 / jnp.sqrt(running_var + eps)
    y = (x_nchw - running_mean[None, :, None, None]) * inv_std[None, :, None, None]
    y = y * gamma[None, :, None, None] + beta[None, :, None, None]
    y = _apply_activ(y, activ_fn)
    out = lax.conv_general_dilated(
        y, w_oihw, window_strides=(1, 1), padding=[(pad, pad), (pad, pad)],
        dimension_numbers=("NCHW", "OIHW", "NCHW"))
    return out + bias[None, :, None, None]


if __name__ == "__main__":
    # Module hyper-parameters (small, consistent with DenseConvBlock(ichan, features, kernel, pad, 'SiLU'))
    N, C, H, W = 2, 4, 16, 16
    FEATURES, KERNEL, PAD = 8, 3, 1
    ACTIV = "SiLU"

    key = jax.random.PRNGKey(0)
    kx, kw, kb, kg, kbeta, km, kv = jax.random.split(key, 7)

    x = jax.random.normal(kx, (N, C, H, W), jnp.float32)

    # Deterministic synthetic parameters (shapes follow the module __init__)
    w = jax.random.normal(kw, (FEATURES, C, KERNEL, KERNEL), jnp.float32) * 0.1   # Conv2d weight (OIHW)
    b = jax.random.normal(kb, (FEATURES,), jnp.float32) * 0.1                     # Conv2d bias
    gamma = 1.0 + 0.1 * jax.random.normal(kg, (C,), jnp.float32)                  # BN weight
    beta = 0.1 * jax.random.normal(kbeta, (C,), jnp.float32)                      # BN bias
    running_mean = 0.1 * jax.random.normal(km, (C,), jnp.float32)                 # BN running_mean
    running_var = jax.random.uniform(kv, (C,), jnp.float32, 0.5, 1.5)             # BN running_var

    out = dense_conv_block(x, gamma, beta, running_mean, running_var, w, b,
                           pad=PAD, activ_fn=ACTIV)
    out = jax.block_until_ready(out)

    ref = _reference(x, gamma, beta, running_mean, running_var, w, b,
                     pad=PAD, activ_fn=ACTIV)
    ref = jax.block_until_ready(ref)

    assert out.shape == (N, FEATURES, H, W), out.shape
    # bf16 matmul operands (f32 accumulation) -> bf16-level tolerance vs. the f32 reference.
    if not jnp.allclose(out, ref, atol=2e-2, rtol=2e-2):
        max_err = jnp.max(jnp.abs(out - ref))
        raise AssertionError(f"Pallas kernel output does not match reference (max |err| = {max_err})")

    print("KERNEL_OK")
</pallas_src>

<mosaic_0001>
module attributes {stable_mosaic.version = 11 : i64} {
  func.func @_dense_conv_block_kernel(%arg0: i32, %arg1: i32, %arg2: memref<1x16x64xf32, #tpu.memory_space<vmem>>, %arg3: memref<1x64xf32, #tpu.memory_space<vmem>>, %arg4: memref<1x64xf32, #tpu.memory_space<vmem>>, %arg5: memref<3x64x128xbf16, #tpu.memory_space<vmem>>, %arg6: memref<1x128xf32, #tpu.memory_space<vmem>>, %arg7: memref<1x8x128xf32, #tpu.memory_space<vmem>>, %arg8: memref<25x64xf32, #tpu.memory_space<vmem>>) attributes {dimension_semantics = [#tpu.dimension_semantics<parallel>, #tpu.dimension_semantics<arbitrary>], iteration_bounds = array<i64: 2, 2>, scalar_prefetch = 0 : i64, scratch_operands = 1 : i64, tpu.core_type = #tpu.core_type<tc>, window_params = [{transform_indices = @transform_0, window_bounds = array<i64: 1, 16, 64>}, {pipeline_mode = #tpu.pipeline_mode<synchronous>, transform_indices = @transform_1, window_bounds = array<i64: 1, 64>}, {pipeline_mode = #tpu.pipeline_mode<synchronous>, transform_indices = @transform_2, window_bounds = array<i64: 1, 64>}, {pipeline_mode = #tpu.pipeline_mode<synchronous>, transform_indices = @transform_3, window_bounds = array<i64: 3, 64, 128>}, {pipeline_mode = #tpu.pipeline_mode<synchronous>, transform_indices = @transform_4, window_bounds = array<i64: 1, 128>}, {transform_indices = @transform_5, window_bounds = array<i64: 1, 8, 128>}]} {
    %c0_i32 = arith.constant 0 : i32
    %0 = arith.cmpi eq, %arg1, %c0_i32 : i32
    %1 = arith.extui %0 : i1 to i32
    %c0_i32_0 = arith.constant 0 : i32
    %2 = arith.cmpi ne, %1, %c0_i32_0 : i32
    scf.if %2 {
      %c0_21 = arith.constant 0 : index
      %c0_22 = arith.constant 0 : index
      %c0_23 = arith.constant 0 : index
      %40 = vector.load %arg2[%c0_21, %c0_22, %c0_23] : memref<1x16x64xf32, #tpu.memory_space<vmem>>, vector<1x16x64xf32>
      %41 = vector.shape_cast %40 : vector<1x16x64xf32> to vector<16x64xf32>
      %c0_24 = arith.constant 0 : index
      %c0_25 = arith.constant 0 : index
      %42 = vector.load %arg3[%c0_24, %c0_25] : memref<1x64xf32, #tpu.memory_space<vmem>>, vector<1x64xf32>
      %43 = vector.shape_cast %42 : vector<1x64xf32> to vector<64xf32>
      %44 = vector.shape_cast %43 : vector<64xf32> to vector<1x64xf32>
      %45 = vector.broadcast %44 : vector<1x64xf32> to vector<16x64xf32>
      %46 = arith.mulf %41, %45 : vector<16x64xf32>
      %c0_26 = arith.constant 0 : index
      %c0_27 = arith.constant 0 : index
      %47 = vector.load %arg4[%c0_26, %c0_27] : memref<1x64xf32, #tpu.memory_space<vmem>>, vector<1x64xf32>
      %48 = vector.shape_cast %47 : vector<1x64xf32> to vector<64xf32>
      %49 = vector.shape_cast %48 : vector<64xf32> to vector<1x64xf32>
      %50 = vector.broadcast %49 : vector<1x64xf32> to vector<16x64xf32>
      %51 = arith.addf %46, %50 : vector<16x64xf32>
      %52 = arith.negf %51 : vector<16x64xf32>
      %53 = math.exp %52 : vector<16x64xf32>
      %cst_28 = arith.constant 1.000000e+00 : f32
      %54 = vector.broadcast %cst_28 : f32 to vector<16x64xf32>
      %55 = arith.addf %54, %53 : vector<16x64xf32>
      %56 = arith.divf %54, %55 : vector<16x64xf32>
      %57 = arith.mulf %51, %56 : vector<16x64xf32>
      %cst_29 = arith.constant 0.000000e+00 : f32
      %58 = vector.broadcast %cst_29 : f32 to vector<8x64xf32>
      %c0_30 = arith.constant 0 : index
      %c0_31 = arith.constant 0 : index
      %59 = vector.load %arg8[%c0_30, %c0_31] : memref<25x64xf32, #tpu.memory_space<vmem>>, vector<8x64xf32>
      tpu.vector_store %arg8[%c0_30, %c0_31], %58 {strides = array<i32>} : memref<25x64xf32, #tpu.memory_space<vmem>>, vector<8x64xf32>,
      %cst_32 = arith.constant 0.000000e+00 : f32
      %60 = vector.broadcast %cst_32 : f32 to vector<1x64xf32>
      %c24 = arith.constant 24 : index
      %c0_33 = arith.constant 0 : index
      %61 = vector.load %arg8[%c24, %c0_33] : memref<25x64xf32, #tpu.memory_space<vmem>>, vector<1x64xf32>
      tpu.vector_store %arg8[%c24, %c0_33], %60 {strides = array<i32>} : memref<25x64xf32, #tpu.memory_space<vmem>>, vector<1x64xf32>,
      %c8 = arith.constant 8 : index
      %c0_34 = arith.constant 0 : index
      %62 = vector.load %arg8[%c8, %c0_34] : memref<25x64xf32, #tpu.memory_space<vmem>>, vector<16x64xf32>
      tpu.vector_store %arg8[%c8, %c0_34], %57 {strides = array<i32>} : memref<25x64xf32, #tpu.memory_space<vmem>>, vector<16x64xf32>,
    } else {
    }
    %c8_i32 = arith.constant 8 : i32
    %3 = arith.muli %arg1, %c8_i32 : i32
    %cst = arith.constant 0.000000e+00 : f32
    %4 = vector.broadcast %cst : f32 to vector<8x128xf32>
    %c7_i32 = arith.constant 7 : i32
    %5 = arith.addi %c7_i32, %3 : i32
    %c0_i32_1 = arith.constant 0 : i32
    %6 = arith.addi %5, %c0_i32_1 : i32
    %7 = arith.index_cast %6 : i32 to index
    %c0 = arith.constant 0 : index
    %8 = vector.load %arg8[%7, %c0] : memref<25x64xf32, #tpu.memory_space<vmem>>, vector<8x64xf32>
    %9 = arith.truncf %8 : vector<8x64xf32> to vector<8x64xbf16>
    %c0_2 = arith.constant 0 : index
    %c0_3 = arith.constant 0 : index
    %c0_4 = arith.constant 0 : index
    %10 = vector.load %arg5[%c0_2, %c0_3, %c0_4] : memref<3x64x128xbf16, #tpu.memory_space<vmem>>, vector<1x64x128xbf16>
    %11 = vector.shape_cast %10 : vector<1x64x128xbf16> to vector<64x128xbf16>
    %cst_5 = arith.constant dense<0.000000e+00> : vector<8x128xf32>
    %12 = tpu.matmul %9, %11, %cst_5 {dimension_numbers = #tpu.dot_dimension_numbers<[1], [0], [0], [1], [0, 0, 1, 1], [], []>} : vector<8x64xbf16>, vector<64x128xbf16>, vector<8x128xf32> -> vector<8x128xf32>
    %13 = arith.addf %4, %12 : vector<8x128xf32>
    %c7_i32_6 = arith.constant 7 : i32
    %14 = arith.addi %c7_i32_6, %3 : i32
    %c1_i32 = arith.constant 1 : i32
    %15 = arith.addi %14, %c1_i32 : i32
    %16 = arith.index_cast %15 : i32 to index
    %c0_7 = arith.constant 0 : index
    %17 = vector.load %arg8[%16, %c0_7] : memref<25x64xf32, #tpu.memory_space<vmem>>, vector<8x64xf32>
    %18 = arith.truncf %17 : vector<8x64xf32> to vector<8x64xbf16>
    %c1 = arith.constant 1 : index
    %c0_8 = arith.constant 0 : index
    %c0_9 = arith.constant 0 : index
    %19 = vector.load %arg5[%c1, %c0_8, %c0_9] : memref<3x64x128xbf16, #tpu.memory_space<vmem>>, vector<1x64x128xbf16>
    %20 = vector.shape_cast %19 : vector<1x64x128xbf16> to vector<64x128xbf16>
    %cst_10 = arith.constant dense<0.000000e+00> : vector<8x128xf32>
    %21 = tpu.matmul %18, %20, %cst_10 {dimension_numbers = #tpu.dot_dimension_numbers<[1], [0], [0], [1], [0, 0, 1, 1], [], []>} : vector<8x64xbf16>, vector<64x128xbf16>, vector<8x128xf32> -> vector<8x128xf32>
    %22 = arith.addf %13, %21 : vector<8x128xf32>
    %c7_i32_11 = arith.constant 7 : i32
    %23 = arith.addi %c7_i32_11, %3 : i32
    %c2_i32 = arith.constant 2 : i32
    %24 = arith.addi %23, %c2_i32 : i32
    %25 = arith.index_cast %24 : i32 to index
    %c0_12 = arith.constant 0 : index
    %26 = vector.load %arg8[%25, %c0_12] : memref<25x64xf32, #tpu.memory_space<vmem>>, vector<8x64xf32>
    %27 = arith.truncf %26 : vector<8x64xf32> to vector<8x64xbf16>
    %c2 = arith.constant 2 : index
    %c0_13 = arith.constant 0 : index
    %c0_14 = arith.constant 0 : index
    %28 = vector.load %arg5[%c2, %c0_13, %c0_14] : memref<3x64x128xbf16, #tpu.memory_space<vmem>>, vector<1x64x128xbf16>
    %29 = vector.shape_cast %28 : vector<1x64x128xbf16> to vector<64x128xbf16>
    %cst_15 = arith.constant dense<0.000000e+00> : vector<8x128xf32>
    %30 = tpu.matmul %27, %29, %cst_15 {dimension_numbers = #tpu.dot_dimension_numbers<[1], [0], [0], [1], [0, 0, 1, 1], [], []>} : vector<8x64xbf16>, vector<64x128xbf16>, vector<8x128xf32> -> vector<8x128xf32>
    %31 = arith.addf %22, %30 : vector<8x128xf32>
    %c0_16 = arith.constant 0 : index
    %c0_17 = arith.constant 0 : index
    %32 = vector.load %arg6[%c0_16, %c0_17] : memref<1x128xf32, #tpu.memory_space<vmem>>, vector<1x128xf32>
    %33 = vector.shape_cast %32 : vector<1x128xf32> to vector<128xf32>
    %34 = vector.shape_cast %33 : vector<128xf32> to vector<1x128xf32>
    %35 = vector.broadcast %34 : vector<1x128xf32> to vector<8x128xf32>
    %36 = arith.addf %31, %35 : vector<8x128xf32>
    %c0_18 = arith.constant 0 : index
    %c0_19 = arith.constant 0 : index
    %c0_20 = arith.constant 0 : index
    %37 = vector.load %arg7[%c0_18, %c0_19, %c0_20] : memref<1x8x128xf32, #tpu.memory_space<vmem>>, vector<1x8x128xf32>
    %38 = vector.shape_cast %37 : vector<1x8x128xf32> to vector<8x128xf32>
    %39 = vector.shape_cast %36 : vector<8x128xf32> to vector<1x8x128xf32>
    tpu.vector_store %arg7[%c0_18, %c0_19, %c0_20], %39 {strides = array<i32>} : memref<1x8x128xf32, #tpu.memory_space<vmem>>, vector<1x8x128xf32>,
    return
  }
  func.func @transform_0(%arg0: i32, %arg1: i32) -> (i32, i32, i32) {
    %c0_i32 = arith.constant 0 : i32
    %c0_i32_0 = arith.constant 0 : i32
    %c0_i32_1 = arith.constant 0 : i32
    return %arg0, %c0_i32, %c0_i32_0 : i32, i32, i32
  }
  func.func @transform_1(%arg0: i32, %arg1: i32) -> (i32, i32) {
    %c0_i32 = arith.constant 0 : i32
    %c0_i32_0 = arith.constant 0 : i32
    %c0_i32_1 = arith.constant 0 : i32
    return %c0_i32, %c0_i32_0 : i32, i32
  }
  func.func @transform_2(%arg0: i32, %arg1: i32) -> (i32, i32) {
    %c0_i32 = arith.constant 0 : i32
    %c0_i32_0 = arith.constant 0 : i32
    %c0_i32_1 = arith.constant 0 : i32
    return %c0_i32, %c0_i32_0 : i32, i32
  }
  func.func @transform_3(%arg0: i32, %arg1: i32) -> (i32, i32, i32) {
    %c0_i32 = arith.constant 0 : i32
    %c0_i32_0 = arith.constant 0 : i32
    %c0_i32_1 = arith.constant 0 : i32
    %c0_i32_2 = arith.constant 0 : i32
    return %c0_i32, %c0_i32_0, %c0_i32_1 : i32, i32, i32
  }
  func.func @transform_4(%arg0: i32, %arg1: i32) -> (i32, i32) {
    %c0_i32 = arith.constant 0 : i32
    %c0_i32_0 = arith.constant 0 : i32
    %c0_i32_1 = arith.constant 0 : i32
    return %c0_i32, %c0_i32_0 : i32, i32
  }
  func.func @transform_5(%arg0: i32, %arg1: i32) -> (i32, i32, i32) {
    %c0_i32 = arith.constant 0 : i32
    %c0_i32_0 = arith.constant 0 : i32
    return %arg0, %arg1, %c0_i32 : i32, i32, i32
  }
}

</mosaic_0001>

<bundles_post_ra>
// kernel: tpu_custom_call.1
= control target key start
LH: loop header
LB: loop body
LE: loop exit
PB: predicated region body
PF: predicated region fallthrough
CT: control target
= control target key end

     0   :  { %s1440_s0 = inlined_call_operand.hbm [shape: f32[2,16,64], index: 0, kind: input, shape index: {}]   ;;  %s1441_s1 = inlined_call_operand.vmem [shape: f32[1,64], index: 1, kind: input, shape index: {}]   ;;  %s1442_s2 = inlined_call_operand.vmem [shape: f32[1,64], index: 2, kind: input, shape index: {}]   ;;  %s1443_s3 = inlined_call_operand.hbm [shape: bf16[3,64,128], index: 3, kind: input, shape index: {}]   ;;  %s1444_s4 = inlined_call_operand.vmem [shape: f32[1,128], index: 4, kind: input, shape index: {}]   ;;  %s1445_s5 = inlined_call_operand.hbm [shape: f32[2,16,128], index: 5, kind: output, shape index: {}]  }
   0x1   :  { %1457 = sst [smem:[#allocation17_spill]] %s1443_s3 }
   0x2   :  { %1458 = sst [smem:[#allocation18_spill]] %s1444_s4 }
   0x3   :  { %1459 = sst [smem:[#allocation19_spill]] %s1445_s5 }
   0x4   :  { %10 = vsyncpa [#allocation4], 0 }
   0x5   :  { %12 = vsyncpa [#allocation4 + $0x1], 0 }
   0x6   :  { %13 = vsyncpa [#allocation7], 0 }
   0x7   :  { %14 = vsyncpa [#allocation5], 0 }
   0x8   :  { %16 = vsyncpa [#allocation5 + $0x1], 0  ;;  %s1148_s18 = smov 0   ;;  %s1150_s19 = smov 0  }
   0x9   :  { %s1152_s20 = smov 0   ;;  %s1154_s21 = smov 0  }
   0xa   :  { %s1156_s22 = smov 0   ;;  %s1158_s23 = smov 0  }
   0xb   :  { %s1160_s24 = smov 0   ;;  %s1162_s25 = smov 0  }
   0xc   :  { %s1164_s26 = smov 0   ;;  %s1166_s27 = smov 0  }
   0xd   :  { %s1168_s28 = smov 0  }
   0xe LB: > { %1460 = sst [smem:[#allocation12_spill]] %s1066_s18  ;;  %s686_s29 = sadd.s32 4294967295, %s1106_s28   ;;  %s1106_s28 = sphi %s1168_s28, %s22_s28   ;;  %s1102_s27 = sphi %s1166_s27, %s1495_s27   ;;  %s1098_s26 = sphi %s1164_s26, %s1494_s26   ;;  %s1094_s25 = sphi %s1162_s25, %s1493_s25   ;;  %s1090_s24 = sphi %s1160_s24, %s1484_s24   ;;  %s1086_s23 = sphi %s1158_s23, %s1492_s23   ;;  %s1082_s22 = sphi %s1156_s22, %s1491_s22   ;;  %s1078_s21 = sphi %s1154_s21, %s1490_s21   ;;  %s1074_s20 = sphi %s1152_s20, %s1489_s20   ;;  %s1070_s19 = sphi %s1150_s19, %s1488_s19   ;;  %s1066_s18 = sphi %s1148_s18, %s1487_s18  }
   0xf   : > { %1461 = sst [smem:[#allocation13_spill]] %s1098_s26  ;;  %s687_s30 = sadd.s32 4294967294, %s1106_s28  }
  0x10   : > { %p54_p0 = scmp.ne.s32.totalorder %s1082_s22, %s1078_s21  ;;  %p1204_p1 = scmp.eq.s32.totalorder %s686_s29, 0 }
  0x11   : > { %p163_p2 = scmp.ne.s32.totalorder %s1074_s20, %s1070_s19  ;;  %p164_p4 = scmp.eq.s32.totalorder %s686_s29, 3 }
  0x12   : > { %s1462_s6 = scalar_select %p1204_p1, 1, 0 }
  0x13   : > { %p1213_p3 = por %p1204_p1, %p54_p0  ;;  %p169_p5 = scmp.ne.s32.totalorder %s1070_s19, %s1066_s18 }
  0x14   : > { %p170_p6 = scmp.eq.s32.totalorder %s687_s30, 3  ;;  %p1219_p7 = por %p164_p4, %p163_p2 }
  0x15   : > { %s1463_s8 = scalar_select %p1213_p3, 1, 0 }
  0x16   : > { %s1464_s9 = scalar_select %p1219_p7, 1, 0 }
  0x17   : > { %p688_p8 = scmp.ge.s32.totalorder %s1106_s28, 1  ;;  %p1224_p9 = por %p170_p6, %p169_p5 }
  0x18   : > { %p177_p10 = scmp.lt.s32.totalorder %s1106_s28, 5  ;;  %s1108_s12 = smov [#allocation6]  }
  0x19   : > { %s1465_s10 = scalar_select %p1224_p9, 1, 0 }
  0x1a   : > { %p1229_p11 = pnand %p688_p8, %p177_p10  ;;  %s195_s13 = sshll.u32 %s1108_s12, 4  ;;  %s196_s13 = int_to_ptr.vmem [resolvable:$true] %s195_s13 }
  0x1b   : > { %1466 = sst [smem:[#allocation14_spill]] %s1465_s10  ;;  %s1469_s3 = sld [smem:[#allocation17_spill]] }
  0x1c   : > { %s1467_s11 = scalar_select %p1229_p11, 1, 0 }
  0x1d   : > { %p790_p12 = pneg %p1229_p11 }
  0x1f   : > { %p1237_p13 = pnand %p790_p12, %p1204_p1 }
  0x21   : > { %s922_s17 = scalar_lea.hbm %s1469_s3, 1536  ;;  %p924_p2 = pneg %p1237_p13 }
  0x22   : > { %p923_p0 = scmp.ne.s32.totalorder %s1469_s3, %s922_s17  ;;  %p929_p6 = scmp.lt.u32.totalorder %s922_s17, %s1469_s3 }
  0x24   : > { %p925_p4 = pnand %p924_p2, %p923_p0 }
  0x26   : > { %p926_p5 = pneg %p925_p4 }
  0x28   : > { %p931_p8 = pnand %p929_p6, %p926_p5 }
  0x2a   : > { %934 = shalt.err (!%p931_p8)
}
  0x2b   : > { %s935_s7 = scalar_lea.vmem %s196_s13, 1536  ;;  %p943_p7 = scmp.lt.s32.totalorder %s196_s13, %s196_s13 }
  0x2c   : > { %p936_p10 = scmp.ne.s32.totalorder %s196_s13, %s935_s7  ;;  %p944_p1 = scmp.lt.s32.totalorder %s935_s7, %s935_s7 }
  0x2e   : > { %p938_p12 = pnand %p936_p10, %p924_p2  ;;  %p945_p3 = por %p944_p1, %p943_p7 }
  0x30   : > { %p939_p9 = pneg %p938_p12 }
  0x32   : > { %p946_p11 = pnand %p945_p3, %p939_p9 }
  0x34   : > { %949 = shalt.err (!%p946_p11)
}
  0x35   : > { %s1109_s15 = smov 64   ;;  %s1110_s16 = smov 4  }
  0x36   : > { %793 = dma.hbm_to_vmem [thread:$0]  (!%p1237_p13), %s1469_s3, 1536, %s196_s13, [#allocation7], %s1109_s15, %s1109_s15, %s1110_s16  }
  0x37   : > { %s31_s7 = sadd.s32 1, %s1098_s26  ;;  %s34_s29 = sadd.s32 1, %s1102_s27 }
  0x38   : > { %p32_p1 = scmp.ge.s32.totalorder %s31_s7, 2  ;;  %s41_s30 = sadd.s32 1, %s1086_s23 }
  0x39   : > { %p48_p3 = scmp.ne.s32.totalorder %s1086_s23, %s1082_s22  ;;  %p49_p7 = scmp.eq.s32.totalorder %s1106_s28, 0 }
  0x3a   : > { %s1497_s7 = smov (%p32_p1, %s31_s7), 0  ;;  %s1499_s29 = smov (!%p32_p1, %s34_s29), %s1102_s27 }
  0x3b   : > { %1470 = sst [smem:[#allocation15_spill]] %s1497_s7  ;;  %s149_s14 = ssub.s32 %s1098_s26, %s1497_s7 }
  0x3c   : > { %p36_p9 = scmp.ge.s32.totalorder %s1499_s29, 2  ;;  %p803_p11 = scmp.lt.s32.totalorder %s1106_s28, 4 }
  0x3d   : > { %p1269_p13 = por %p49_p7, %p48_p3  ;;  %s212_s12 = sand.u32 1, %s1086_s23  }
  0x3e   : > { %s1501_s29 = smov (%p36_p9, %s1499_s29), 0  ;;  %s691_s15 = sshll.u32 %s212_s12, 4 }
  0x3f   : > { %1472 = sst [smem:[#allocation16_spill]] %s1501_s29  ;;  %s38_s16 = ssub.s32 %s1102_s27, %s1501_s29 }
  0x40   : > { %p39_p0 = scmp.eq.s32.totalorder %s38_s16, 0  ;;  %s150_s17 = sor.u32 %s149_s14, %s38_s16 }
  0x41   : > { %p151_p2 = scmp.eq.s32.totalorder %s150_s17, 0  ;;  %s730_s21 = sshll.u32 %s1102_s27, 8 }
  0x42   : > { %s1280_s3 = scalar_select %p39_p0, %s1086_s23, %s41_s30  }
  0x43   : > { %s1473_s7 = sadd.s32 1, %s1074_s20  ;;  %s1290_s5 = scalar_lea.hbm %s1440_s0, %s730_s21 }
  0x44   : > { %s1285_s26 = scalar_select %p151_p2, %s1074_s20, %s1473_s7  }
  0x45   : > { %s216_s4 = scalar_lea.vmem [#allocation3], %s691_s15  ;;  %p1298_p4 = pnand %p803_p11, %p1269_p13 }
  0x46   : > { %s223_s29 = sshll.u32 %s216_s4, 4  ;;  %s1302_s7 = scalar_lea.sflag [#allocation4], %s212_s12  ;;  %s1292_s29 = int_to_ptr.vmem [resolvable:$true] %s223_s29 }
  0x47   : > { %s950_s18 = scalar_lea.hbm %s1290_s5, 256  ;;  %p952_p6 = pneg %p1298_p4 }
  0x48   : > { %p951_p5 = scmp.ne.s32.totalorder %s1290_s5, %s950_s18  ;;  %s955_s14 = scalar_lea.hbm %s1440_s0, 512 }
  0x49   : > { %p956_p12 = scmp.lt.u32.totalorder %s1290_s5, %s1440_s0  ;;  %p957_p1 = scmp.lt.u32.totalorder %s955_s14, %s950_s18 }
  0x4a   : > { %p953_p8 = pnand %p952_p6, %p951_p5  ;;  %p959_p7 = scmp.lt.u32.totalorder %s950_s18, %s1290_s5 }
  0x4b   : > { %p958_p3 = por %p957_p1, %p956_p12 }
  0x4c   : > { %p954_p10 = pneg %p953_p8 }
  0x4d   : > { %p960_p9 = por %p959_p7, %p958_p3 }
  0x4f   : > { %p961_p11 = pnand %p960_p9, %p954_p10 }
  0x51   : > { %964 = shalt.err (!%p961_p11)
}
  0x52   : > { %s965_s12 = scalar_lea.vmem %s1292_s29, 256  ;;  %s1111_s16 = smov [#allocation3]  }
  0x53   : > { %p966_p13 = scmp.ne.s32.totalorder %s1292_s29, %s965_s12  ;;  %s970_s17 = sshll.u32 %s1111_s16, 4  ;;  %s971_s17 = int_to_ptr.vmem [resolvable:$false] %s970_s17 }
  0x54   : > { %s972_s21 = scalar_lea.vmem %s971_s17, 512  ;;  %p973_p5 = scmp.lt.s32.totalorder %s1292_s29, %s971_s17 }
  0x55   : > { %p968_p0 = pnand %p966_p13, %p952_p6  ;;  %p974_p8 = scmp.lt.s32.totalorder %s972_s21, %s965_s12 }
  0x57   : > { %p969_p2 = pneg %p968_p0  ;;  %p975_p12 = por %p974_p8, %p973_p5 }
  0x59   : > { %p976_p1 = pnand %p975_p12, %p969_p2 }
  0x5b   : > { %979 = shalt.err (!%p976_p1)
}
  0x5c   : > { %s1112_s18 = smov 128   ;;  %s1113_s4 = smov 8  }
  0x5d   : > { %797 = dma.hbm_to_vmem [thread:$0]  (!%p1298_p4), %s1290_s5, 256, %s1292_s29, %s1302_s7, %s1112_s18, %s1112_s18, %s1113_s4  }
  0x5e   : > { %p1475_p6 = scmp.ne.s32.totalorder %s1467_s11, 0 }
  0x5f   : > { %s237_s10 = sand.u32 (!%p1475_p6), 1, %s1082_s22   ;;  %p1476_p10 = scmp.ne.s32.totalorder (!%p1475_p6), %s1463_s8, 0 }
  0x60   : > { %235 = sbr.rel (%p1475_p6) target bundleno = 407 (0x197), region = 40  ;;  %s695_s14 = sshll.u32 (!%p1475_p6), %s237_s10, 4 }
  0x61   : > { %s238_s13 = scalar_lea.sflag (!%p1475_p6), [#allocation4], %s237_s10  ;;  %s241_s15 = scalar_lea.vmem (!%p1475_p6), [#allocation3], %s695_s14 }
  0x67   : > { %1053 = dma.done.wait (%p1476_p10), %s238_s13, 256  }
  0x68   : > { %1055 = vsyncadd (%p1476_p10), %s238_s13, 4294967040  ;;  %p1477_p3 = scmp.ne.s32.totalorder %s1462_s6, 0 }
  0x6a   : > { %1057 = dma.done.wait (%p1477_p3), [#allocation7], 1536  }
  0x6b   : > { %1059 = vsyncadd (%p1477_p3), [#allocation7], 4294965760  ;;  %s269_s5 = sand.u32 1, %s1070_s19   ;;  %p698_p4 = scmp.ne.s32.totalorder %s1090_s24, 0 }
  0x6c   : > { %s1344_s11 = sshll.u32 %s269_s5, 3  ;;  %vm311_vm0 = vcmask (!%p698_p4), 523264   ;;  %vm313_vm1 = vcmask (!%p698_p4), 516096   ;;  %v277_v0 = vld [vmem:[%s241_s15] sm:$0xff] (!%p698_p4)  ;;  %v1114_v2 = vmov (!%p698_p4), 0.0   ;;  %v278_v5 = vld [vmem:[%s241_s15 + $0x8] sm:$0xff] (!%p698_p4) }
  0x6d   : > { %s271_s29 = scalar_lea.vmem [#allocation8], %s1344_s11  ;;  %276 = sbr.rel (%p698_p4) target bundleno = 144 (0x90), region = 52  ;;  %v699_v1 = vld [vmem:[%s1441_s1] ss:$0 sm:$0xff] (!%p698_p4)  ;;  %312 = vst.msk [vmem:[#allocation2] sm:$0xff] (!%p698_p4), %vm311_vm0, %v1114_v2 }
  0x6e   : > { %314 = vst.msk [vmem:[#allocation2 + $0x18] sm:$0x1] (!%p698_p4), %vm313_vm1, %v1114_v2  ;;  %v286_v3 = vmul.f32 (!%p698_p4), %v699_v1, %v277_v0  ;;  %v700_v4 = vld [vmem:[%s1442_s2] ss:$0 sm:$0xff] (!%p698_p4)  ;;  %v287_v6 = vmul.f32 (!%p698_p4), %v699_v1, %v278_v5 }
  0x70   : > { %v295_v7 = vadd.f32 (!%p698_p4), %v700_v4, %v286_v3  ;;  %v296_v8 = vadd.f32 (!%p698_p4), %v700_v4, %v287_v6 }
  0x72   : > { %v701_v9 = vmul.f32 (!%p698_p4), -1.442695, %v295_v7  ;;  %v702_v10 = vmul.f32 (!%p698_p4), -1.442695, %v296_v8 }
  0x74   : > { %902 = vpow2.f32 %v701_v9 }
  0x75   : > { %904 = vpow2.f32 %v702_v10 }
  0x7e   : > { %v903_v11 = vpop.eup %902 }
  0x7f   : > { %v905_v12 = vpop.eup %904  ;;  %v303_v13 = vadd.f32 1.0, %v903_v11 }
  0x80   : > { %v304_v14 = vadd.f32 1.0, %v905_v12 }
  0x81   : > { %906 = vrcp.f32 %v303_v13 }
  0x82   : > { %908 = vrcp.f32 %v304_v14 }
  0x8b   : > { %v907_v15 = vpop.eup %906 }
  0x8c   : > { %v909_v16 = vpop.eup %908  ;;  %v309_v17 = vmul.f32 %v907_v15, %v295_v7 }
  0x8d   : > { %v310_v18 = vmul.f32 %v909_v16, %v296_v8 }
  0x8e   : > { %315 = vst.msk [vmem:[#allocation2 + $0x8] sm:$0xff] %vm311_vm0, %v309_v17 }
  0x8f   : > { %316 = vst.msk [vmem:[#allocation2 + $0x10] sm:$0xff] %vm311_vm0, %v310_v18 }
  0x90 PF: > { %v910_v19 = vld [vmem:[#allocation6 + $0x20] sm:$0xff]   ;;  %v1115_v20 = vmov 0.0   ;;  %v912_v22 = vld [vmem:[#allocation6 + $0x28] sm:$0xff]   ;;  %vm1116_vm2 = vmmov 0   ;;  %s703_s12 = sshll.u32 %s1090_s24, 3  ;;  %v914_v24 = vld [vmem:[#allocation6 + $0x30] sm:$0xff]  }
  0x91   : > { %746 = vmatprep.subr.bf16.mxu0 %v1115_v20  ;;  %758 = vmatprep.subr.bf16.mxu1 %v1115_v20  ;;  %v911_v21 = vld [vmem:[#allocation6] sm:$0xff]   ;;  %v913_v23 = vld [vmem:[#allocation6 + $0x8] sm:$0xff]   ;;  %v915_v25 = vld [vmem:[#allocation6 + $0x10] sm:$0xff]   ;;  %s624_s16 = scalar_lea.vmem [#allocation2], %s703_s12  ;;  %vm367_vm3 = vcmask 523264   ;;  %s726_s17 = sshll.u32 %s1094_s25, 1 }
  0x92   : > { %747 = vmatpush3.bf16.msra.mxu0 %v910_v19  ;;  %754 = vmatprep.mubr.msk.bf16.mxu0 %vm1116_vm2, %v1115_v20  ;;  %v916_v26 = vld [vmem:[#allocation6 + $0x38] sm:$0xff]   ;;  %v918_v32 = vld [vmem:[#allocation6 + $0x40] sm:$0xff]   ;;  %v919_v33 = vld [vmem:[#allocation6 + $0x48] sm:$0xff]   ;;  %s580_s21 = sadd.s32 %s1090_s24, %s726_s17  ;;  %s1478_s10 = sld [smem:[#allocation18_spill]] }
  0x93   : > { %759 = vmatpush3.bf16.msra.mxu1 %v911_v21  ;;  %748 = vmatprep.subr.bf16.mxu0 %v1115_v20  ;;  %v917_v27 = vld [vmem:[#allocation6 + $0x18] sm:$0xff]   ;;  %v920_v34 = vld [vmem:[#allocation6 + $0x50] sm:$0xff]   ;;  %s727_s14 = sshll.u32 %s580_s21, 7  ;;  %s584_s13 = sshll.u32 %s271_s29, 4  ;;  %s1376_s13 = int_to_ptr.vmem [resolvable:$true] %s584_s13 }
  0x94   : > { %760 = vmatprep.subr.bf16.mxu1 %v1115_v20  ;;  %766 = vmatprep.mubr.msk.bf16.mxu1 %vm1116_vm2, %v1115_v20  ;;  %v921_v35 = vld [vmem:[#allocation6 + $0x58] sm:$0xff]   ;;  %s1479_s30 = sld [smem:[#allocation19_spill]]  ;;  %s569_s24 = scalar_lea.sflag [#allocation5], %s269_s5 }
  0x95   : > { %s980_s25 = scalar_lea.vmem %s1376_s13, 128  ;;  %p1480_p9 = scmp.ne.s32.totalorder %s1464_s9, 0 }
  0x96   : > { %749 = vmatpush3.bf16.msra.mxu0 %v912_v22  ;;  %v706_v28 = vld [vmem:[%s624_s16 + $0x8] sm:$0xff]  ;;  %p981_p7 = scmp.ne.s32.totalorder %s1376_s13, %s980_s25  ;;  %s1117_s7 = smov [#allocation8]  }
  0x97   : > { %761 = vmatpush3.bf16.msra.mxu1 %v913_v23  ;;  %750 = vmatprep.subr.bf16.mxu0 %v1115_v20  ;;  %v704_v29 = vld [vmem:[%s624_s16 + $0x7] sm:$0xff]  ;;  %v333_v30 = vpack.c.bf16 %v706_v28, %v706_v28  ;;  %s984_s12 = sshll.u32 %s1117_s7, 4  ;;  %s985_s12 = int_to_ptr.vmem [resolvable:$false] %s984_s12 }
  0x98   : > { %762 = vmatprep.subr.bf16.mxu1 %v1115_v20  ;;  %v321_v31 = vpack.c.bf16 %v704_v29, %v704_v29  ;;  %v718_v36 = vld [vmem:[%s624_s16 + $0x9] sm:$0xff]  ;;  %v724_v48 = vld [vmem:[%s1478_s10] ss:$0 sm:$0xff]  ;;  %p982_p11 = pnand %p981_p7, %p1480_p9  ;;  %s986_s16 = scalar_lea.vmem %s985_s12, 256 }
  0x99   : > { %v481_v37 = vpack.c.bf16 %v718_v36, %v718_v36  ;;  %p987_p0 = scmp.lt.s32.totalorder %s1376_s13, %s985_s12  ;;  %p988_p2 = scmp.lt.s32.totalorder %s986_s16, %s980_s25 }
  0x9a   : > { %751 = vmatpush3.bf16.msra.mxu0 %v914_v24  ;;  %s1374_s6 = scalar_lea.hbm %s1479_s30, %s727_s14  ;;  %p983_p13 = pneg %p982_p11 }
  0x9b   : > { %763 = vmatpush3.bf16.msra.mxu1 %v915_v25  ;;  %752 = vmatprep.subr.bf16.mxu0 %v1115_v20  ;;  %p989_p5 = por %p988_p2, %p987_p0 }
  0x9c   : > { %764 = vmatprep.subr.bf16.mxu1 %v1115_v20 }
  0x9d   : > { %p990_p8 = pnand %p989_p5, %p983_p13 }
  0x9e   : > { %753 = vmatpush3.bf16.msra.mxu0 %v916_v26 }
  0x9f   : > { %765 = vmatpush3.bf16.msra.mxu1 %v917_v27  ;;  %770 = vmatprep.subr.bf16.mxu0 %v1115_v20 }
  0xa1   : > { %755 = vmatmul.mubr.msk.bf16.vlgmr.msra.gmra.mrb[0].mxu0 %vm367_vm3, %v333_v30 }
  0xa2   : > { %767 = vmatmul.mubr.msk.bf16.vlgmr.msra.gmra.mrb[0].mxu1 %vm367_vm3, %v321_v31  ;;  %771 = vmatpush3.bf16.msra.mxu0 %v918_v32 }
  0xa3   : > { %772 = vmatprep.subr.bf16.mxu0 %v1115_v20  ;;  %778 = vmatprep.mubr.msk.bf16.mxu0 %vm1116_vm2, %v1115_v20 }
  0xa6   : > { %773 = vmatpush3.bf16.msra.mxu0 %v919_v33 }
  0xa7   : > { %774 = vmatprep.subr.bf16.mxu0 %v1115_v20 }
  0xaa   : > { %775 = vmatpush3.bf16.msra.mxu0 %v920_v34 }
  0xab   : > { %776 = vmatprep.subr.bf16.mxu0 %v1115_v20 }
  0xae   : > { %777 = vmatpush3.bf16.msra.mxu0 %v921_v35 }
  0xb1   : > { %779 = vmatmul.mubr.msk.bf16.vlgmr.msra.gmra.mrb[4].mxu0 %vm367_vm3, %v481_v37 }
 0x174   : > { %v405_v38 = vpop.f32.mrb[0].mxu0 }
 0x175   : > { %v756_v39 = vpop.f32.mrb[1].mxu0  ;;  %v472_v40 = vpop.f32.mrb[0].mxu1 }
 0x176   : > { %v473_v41 = vadd.f32 %v472_v40, %v405_v38  ;;  %v408_v42 = vpop.f32.mrb[2].mxu0  ;;  %v768_v43 = vpop.f32.mrb[1].mxu1 }
 0x177   : > { %v757_v44 = vpop.f32.mrb[3].mxu0  ;;  %v475_v45 = vpop.f32.mrb[2].mxu1 }
 0x178   : > { %v769_v46 = vpop.f32.mrb[3].mxu1 }
 0x184   : > { %v552_v47 = vpop.f32.mrb[4].mxu0 }
 0x185   : > { %v558_v49 = vadd.f32 %v552_v47, %v473_v41  ;;  %v780_v50 = vpop.f32.mrb[5].mxu0 }
 0x186   : > { %v555_v51 = vpop.f32.mrb[6].mxu0 }
 0x187   : > { %v566_v52 = vadd.f32 %v724_v48, %v558_v49  ;;  %v781_v53 = vpop.f32.mrb[7].mxu0 }
 0x189   : > { %567 = vst [vmem:[%s271_s29] sm:$0xff] %v566_v52 }
 0x18a   : > { %993 = shalt.err (!%p990_p8)
}
 0x18b   : > { %s994_s5 = scalar_lea.hbm %s1374_s6, 128  ;;  %s998_s17 = scalar_lea.hbm %s1479_s30, 512 }
 0x18c   : > { %p995_p12 = scmp.ne.s32.totalorder %s1374_s6, %s994_s5  ;;  %p999_p10 = scmp.lt.u32.totalorder %s1374_s6, %s1479_s30 }
 0x18d   : > { %p1000_p3 = scmp.lt.u32.totalorder %s998_s17, %s994_s5  ;;  %p1002_p7 = scmp.lt.u32.totalorder %s994_s5, %s1374_s6 }
 0x18e   : > { %p996_p1 = pnand %p995_p12, %p1480_p9 }
 0x18f   : > { %p1001_p4 = por %p1000_p3, %p999_p10 }
 0x190   : > { %p997_p6 = pneg %p996_p1 }
 0x191   : > { %p1003_p11 = por %p1002_p7, %p1001_p4 }
 0x193   : > { %p1004_p13 = pnand %p1003_p11, %p997_p6 }
 0x195   : > { %1007 = shalt.err (!%p1004_p13)
}
 0x196   : > { %788 = dma.vmem_to_hbm [thread:$0]  (%p1480_p9), %s1376_s13, 128, %s1374_s6, %s569_s24  }
 0x197 PF: > { %s1481_s4 = sld [smem:[#allocation12_spill]]  ;;  %s1482_s10 = sld [smem:[#allocation14_spill]] }
 0x198   : > { %p805_p0 = scmp.ge.s32.totalorder %s1106_s28, 2 }
 0x19d   : > { %s596_s14 = sand.u32 1, %s1481_s4   ;;  %p1483_p2 = scmp.ne.s32.totalorder %s1482_s10, 0 }
 0x19e   : > { %s597_s15 = scalar_lea.sflag [#allocation5], %s596_s14 }
 0x19f   : > { %p799_p5 = pnand %p805_p0, %p1483_p2 }
 0x1a1   : > { %1061 = dma.done.wait (!%p799_p5), %s597_s15, 128  }
 0x1a2   : > { %1063 = vsyncadd (!%p799_p5), %s597_s15, 4294967168  ;;  %s22_s28 = sadd.s32 1, %s1106_s28   ;;  %s1484_s24 = sld [smem:[#allocation13_spill]] }
 0x1a3   : > { %p19_p8 = scmp.ge.s32.totalorder %s22_s28, 6   ;;  %s1485_s9 = sld [smem:[#allocation15_spill]] }
 0x1a4   : > { %s1486_s13 = sld [smem:[#allocation16_spill]]  ;;  %s1487_s18 = smov %s1070_s19 }
 0x1a5   : > { %s1488_s19 = smov %s1074_s20  ;;  %s1489_s20 = smov %s1285_s26 }
 0x1a6   : > { %s1490_s21 = smov %s1082_s22  ;;  %s1491_s22 = smov %s1086_s23 }
 0x1a7   : > { %s1492_s23 = smov %s1280_s3  ;;  %s1493_s25 = smov %s1102_s27 }
 0x1a8   :  { %21 = sbr.rel (!%p19_p8) target bundleno = 14 (0xe), region = 98 }
 0x1a9   : > { %s1494_s26 = smov %s1485_s9 }
 0x1aa   : > { %s1495_s27 = smov %s1486_s13 }
 0x1af   :  { %602 = vsyncpa [#allocation4], 1 }
 0x1b0   :  { %604 = vsyncpa [#allocation4 + $0x1], 1 }
 0x1b1   :  { %605 = vsyncpa [#allocation7], 1 }
 0x1b2   :  { %606 = vsyncpa [#allocation5], 1 }
 0x1b3   :  { %608 = vsyncpa [#allocation5 + $0x1], 1 }

</bundles_post_ra>
